<compile_context>
chip_gen: v5e
topology: v5e:2x2
jax: 0.10.0
libtpu: 0.0.40
codegen_flags: <defaults>
</compile_context>

<pallas_src>
import functools
import math

import jax
import jax.numpy as jnp
from jax.experimental import pallas as pl
from jax.experimental.pallas import tpu as pltpu


def _gelu_exact(x):
    # nn.GELU() default is the exact (erf-based) formulation.
    return 0.5 * x * (1.0 + jax.lax.erf(x * (1.0 / math.sqrt(2.0))))


# ------------------------------ Fused kernel --------------------------------

def _cat_kernel(x2_ref, x1_ref, wA_ref, bA_ref, wB_ref, bB_ref, o_ref,
                gate_ref, *, inv_n, repeats):
    # --- gate prologue: once per batch (first row-tile of this batch) -------
    @pl.when(pl.program_id(1) == 0)
    def _compute_gate():
        x1 = x1_ref[0].astype(jnp.float32)                     # (N, Ch)
        mx = jnp.max(x1, axis=0, keepdims=True)                # (1, Ch)
        mn = jnp.sum(x1, axis=0, keepdims=True) * inv_n        # (1, Ch)
        pooled = jnp.concatenate([mx, mn], axis=1)             # (1, 2Ch)
        h = jnp.dot(pooled, wA_ref[...],
                    preferred_element_type=jnp.float32) + bA_ref[...]
        p = jnp.dot(h, wB_ref[...],
                    preferred_element_type=jnp.float32) + bB_ref[...]
        g = _gelu_exact(p)                                     # (1, D)
        if repeats > 1:
            g = jnp.concatenate([g] * repeats, axis=1)         # (1, G), G=repeats*D
        gate_ref[...] = g

    # --- streaming lane/sublane-dense broadcast multiply --------------------
    gate = gate_ref[...].astype(o_ref.dtype)                   # (1, G)
    o_ref[0] = (x2_ref[0] * gate).astype(o_ref.dtype)          # (TR, G)


# ------------------------------ Tiling helpers -------------------------------

def _lcm(a, b):
    return a * b // math.gcd(a, b)


def _pick_row_tiling(rows, width, itemsize, target_bytes=2 << 20):
    """Rows per streamed block (sublane dim) and padded per-batch row count.

    Block is (rows_per_block, width) with width a multiple of 128; rows per
    block are either the full extent or a multiple of 8, ~2 MiB per block so
    in+out double-buffering stays well inside every generation's VMEM budget
    while hitting the large-tile HBM-roofline regime.
    """
    if rows * width * itemsize <= target_bytes:
        return rows, rows                      # single full-extent block / batch
    tr = max(8, (target_bytes // (width * itemsize)) // 8 * 8)
    r_pad = pl.cdiv(rows, tr) * tr
    return tr, r_pad


# --------------------------------- Wrapper -----------------------------------

def cat_forward(x1, x2, w1, b1, w2, b2, w3, b3, w4, b4):
    B, N, Ch = x1.shape
    D = x2.shape[-1]
    Cm = w1.shape[1]
    out_dtype = x2.dtype

    # Fuse the two MLP branches once in the wrapper (block-diag / vstack):
    # concat(max, mean) @ wA + bA  then  @ wB + bB  ==  branch1 + branch2.
    wA = jnp.zeros((2 * Ch, 2 * Cm), jnp.float32)
    wA = wA.at[:Ch, :Cm].set(w1).at[Ch:, Cm:].set(w3)
    bA = jnp.concatenate([b1, b3], axis=1)                     # (1, 2*Cm)
    wB = jnp.concatenate([w2, w4], axis=0)                     # (2*Cm, D)
    bB = b2 + b4                                               # (1, D)

    # Lane/sublane-dense view of inputs2: per batch flatten (N, D) and view as
    # (rows, G) with G = lcm(D, 128) so the gate repeat pattern stays aligned
    # and every store is an unmasked, 128-lane-multiple vst.
    G = _lcm(D, 128)
    L = N * D
    rows = pl.cdiv(L, G)
    itemsize = x2.dtype.itemsize
    TR, rows_pad = _pick_row_tiling(rows, G, itemsize)
    L_pad = rows_pad * G

    x2_flat = x2.reshape(B, L)
    if L_pad != L:
        x2_flat = jnp.pad(x2_flat, ((0, 0), (0, L_pad - L)))
    x2_rows = x2_flat.reshape(B, rows_pad, G)

    n_row_tiles = rows_pad // TR
    grid = (B, n_row_tiles)

    # VMEM budget: streamed in+out blocks double-buffered, resident x1 slice
    # (double-buffered across batches), weights, gate scratch, margin.
    blk_bytes = TR * G * itemsize
    x1_bytes = N * Ch * x1.dtype.itemsize
    w_bytes = 4 * (wA.size + bA.size + wB.size + bB.size)
    vmem_need = 4 * blk_bytes + 2 * x1_bytes + 2 * w_bytes + (2 << 20)
    vmem_limit = int(max(vmem_need, 32 * 1024 * 1024))

    kernel = functools.partial(_cat_kernel, inv_n=1.0 / N, repeats=G // D)

    # TODO(synk): for very large N the resident (N, Ch) x1 slice should be
    # streamed over an extra reduction grid axis instead of held in VMEM.
    out_rows = pl.pallas_call(
        kernel,
        out_shape=jax.ShapeDtypeStruct((B, rows_pad, G), out_dtype),
        grid=grid,
        in_specs=[
            pl.BlockSpec((1, TR, G), lambda b, i: (b, i, 0)),     # streamed x2
            pl.BlockSpec((1, N, Ch), lambda b, i: (b, 0, 0)),     # resident x1
            pl.BlockSpec((2 * Ch, 2 * Cm), lambda b, i: (0, 0)),  # fused W_A
            pl.BlockSpec((1, 2 * Cm), lambda b, i: (0, 0)),       # fused b_A
            pl.BlockSpec((2 * Cm, D), lambda b, i: (0, 0)),       # fused W_B
            pl.BlockSpec((1, D), lambda b, i: (0, 0)),            # fused b_B
        ],
        out_specs=pl.BlockSpec((1, TR, G), lambda b, i: (b, i, 0)),
        scratch_shapes=[pltpu.VMEM((1, G), jnp.float32)],         # gate slab
        compiler_params=pltpu.CompilerParams(
            dimension_semantics=("parallel", "arbitrary"),
            vmem_limit_bytes=vmem_limit),
        cost_estimate=pl.CostEstimate(
            flops=B * (L + 2 * N * Ch + 4 * Ch * Cm + 4 * Cm * D),
            transcendentals=B * D,
            bytes_accessed=2 * B * L_pad * itemsize + B * x1_bytes),
    )(x2_rows, x1, wA, bA, wB, bB)

    out_flat = out_rows.reshape(B, L_pad)
    if L_pad != L:
        out_flat = out_flat[:, :L]
    return out_flat.reshape(B, N, D)


# -------------------------------- Reference ----------------------------------

def reference(x1, x2, w1, b1, w2, b2, w3, b3, w4, b4):
    mx = jnp.max(x1, axis=1, keepdims=True)                    # (B, 1, Ch)
    mn = jnp.mean(x1, axis=1, keepdims=True)                   # (B, 1, Ch)
    p1 = (mx @ w1 + b1) @ w2 + b2
    p2 = (mn @ w3 + b3) @ w4 + b4
    gate = jax.nn.gelu(p1 + p2, approximate=False)
    return x2 * gate


def trunc_normal(key, shape, std=0.02):
    # matches trunc_normal_(std=0.02): N(0, std^2) truncated to [-2std, 2std]
    return std * jax.random.truncated_normal(key, -2.0, 2.0, shape, jnp.float32)


if __name__ == "__main__":
    # Module config: dims=64, resolution=4 -> Ch=32 (dims//2), Cm=16 (dims//4)
    dims, resolution = 64, 4
    Ch, Cm, D = dims // 2, dims // resolution, dims
    B, N = 2, 16

    key = jax.random.PRNGKey(0)
    k = jax.random.split(key, 6)

    x1 = jax.random.normal(k[0], (B, N, Ch), jnp.float32)      # inputs1
    x2 = jax.random.normal(k[1], (B, N, D), jnp.float32)       # inputs2

    # Linear weights stored pre-transposed as (in, out); PyTorch uses (out, in)
    # with y = x @ W.T + b, so the math is identical. Biases init to 0,
    # kept as (1, out) for 2-D VMEM layout.
    w1 = trunc_normal(k[2], (Ch, Cm))
    w2 = trunc_normal(k[3], (Cm, D))
    w3 = trunc_normal(k[4], (Ch, Cm))
    w4 = trunc_normal(k[5], (Cm, D))
    b1 = jnp.zeros((1, Cm), jnp.float32)
    b2 = jnp.zeros((1, D), jnp.float32)
    b3 = jnp.zeros((1, Cm), jnp.float32)
    b4 = jnp.zeros((1, D), jnp.float32)

    out = cat_forward(x1, x2, w1, b1, w2, b2, w3, b3, w4, b4)
    out = jax.block_until_ready(out)

    ref = reference(x1, x2, w1, b1, w2, b2, w3, b3, w4, b4)
    assert out.shape == (B, N, D)
    assert jnp.allclose(out, ref, atol=1e-5, rtol=1e-5), "mismatch vs reference"

    print("KERNEL_OK")
</pallas_src>

<mosaic_0001>
module attributes {stable_mosaic.version = 11 : i64} {
  func.func @_cat_kernel(%arg0: i32, %arg1: i32, %arg2: memref<1x8x128xf32, #tpu.memory_space<vmem>>, %arg3: memref<1x16x32xf32, #tpu.memory_space<vmem>>, %arg4: memref<64x32xf32, #tpu.memory_space<vmem>>, %arg5: memref<1x32xf32, #tpu.memory_space<vmem>>, %arg6: memref<32x64xf32, #tpu.memory_space<vmem>>, %arg7: memref<1x64xf32, #tpu.memory_space<vmem>>, %arg8: memref<1x8x128xf32, #tpu.memory_space<vmem>>, %arg9: memref<1x128xf32, #tpu.memory_space<vmem>>) attributes {dimension_semantics = [#tpu.dimension_semantics<parallel>, #tpu.dimension_semantics<arbitrary>], iteration_bounds = array<i64: 2, 1>, scalar_prefetch = 0 : i64, scratch_operands = 1 : i64, tpu.core_type = #tpu.core_type<tc>, window_params = [{transform_indices = @transform_0, window_bounds = array<i64: 1, 8, 128>}, {transform_indices = @transform_1, window_bounds = array<i64: 1, 16, 32>}, {pipeline_mode = #tpu.pipeline_mode<synchronous>, transform_indices = @transform_2, window_bounds = array<i64: 64, 32>}, {pipeline_mode = #tpu.pipeline_mode<synchronous>, transform_indices = @transform_3, window_bounds = array<i64: 1, 32>}, {pipeline_mode = #tpu.pipeline_mode<synchronous>, transform_indices = @transform_4, window_bounds = array<i64: 32, 64>}, {pipeline_mode = #tpu.pipeline_mode<synchronous>, transform_indices = @transform_5, window_bounds = array<i64: 1, 64>}, {transform_indices = @transform_6, window_bounds = array<i64: 1, 8, 128>}]} {
    %c0_i32 = arith.constant 0 : i32
    %0 = arith.cmpi eq, %arg1, %c0_i32 : i32
    %1 = arith.extui %0 : i1 to i32
    %c0_i32_0 = arith.constant 0 : i32
    %2 = arith.cmpi ne, %1, %c0_i32_0 : i32
    scf.if %2 {
      %c0_8 = arith.constant 0 : index
      %c0_9 = arith.constant 0 : index
      %c0_10 = arith.constant 0 : index
      %11 = vector.load %arg3[%c0_8, %c0_9, %c0_10] : memref<1x16x32xf32, #tpu.memory_space<vmem>>, vector<1x16x32xf32>
      %12 = vector.shape_cast %11 : vector<1x16x32xf32> to vector<16x32xf32>
      %cst = arith.constant dense<0xFF800000> : vector<32xf32>
      %13 = vector.multi_reduction <maximumf>, %12, %cst [0] : vector<16x32xf32> to vector<32xf32>
      %14 = vector.shape_cast %13 : vector<32xf32> to vector<1x32xf32>
      %cst_11 = arith.constant dense<0.000000e+00> : vector<32xf32>
      %15 = vector.multi_reduction <add>, %12, %cst_11 [0] : vector<16x32xf32> to vector<32xf32>
      %16 = vector.shape_cast %15 : vector<32xf32> to vector<1x32xf32>
      %cst_12 = arith.constant 6.250000e-02 : f32
      %17 = vector.broadcast %cst_12 : f32 to vector<1x32xf32>
      %18 = arith.mulf %16, %17 : vector<1x32xf32>
      %19 = tpu.concatenate %14, %18 in 1 : vector<1x32xf32>, vector<1x32xf32> -> vector<1x64xf32>
      %c0_13 = arith.constant 0 : index
      %c0_14 = arith.constant 0 : index
      %20 = vector.load %arg4[%c0_13, %c0_14] : memref<64x32xf32, #tpu.memory_space<vmem>>, vector<64x32xf32>
      %cst_15 = arith.constant dense<0.000000e+00> : vector<1x32xf32>
      %21 = tpu.matmul %19, %20, %cst_15 {dimension_numbers = #tpu.dot_dimension_numbers<[1], [0], [0], [1], [0, 0, 1, 1], [], []>} : vector<1x64xf32>, vector<64x32xf32>, vector<1x32xf32> -> vector<1x32xf32>
      %c0_16 = arith.constant 0 : index
      %c0_17 = arith.constant 0 : index
      %22 = vector.load %arg5[%c0_16, %c0_17] : memref<1x32xf32, #tpu.memory_space<vmem>>, vector<1x32xf32>
      %23 = arith.addf %21, %22 : vector<1x32xf32>
      %c0_18 = arith.constant 0 : index
      %c0_19 = arith.constant 0 : index
      %24 = vector.load %arg6[%c0_18, %c0_19] : memref<32x64xf32, #tpu.memory_space<vmem>>, vector<32x64xf32>
      %cst_20 = arith.constant dense<0.000000e+00> : vector<1x64xf32>
      %25 = tpu.matmul %23, %24, %cst_20 {dimension_numbers = #tpu.dot_dimension_numbers<[1], [0], [0], [1], [0, 0, 1, 1], [], []>} : vector<1x32xf32>, vector<32x64xf32>, vector<1x64xf32> -> vector<1x64xf32>
      %c0_21 = arith.constant 0 : index
      %c0_22 = arith.constant 0 : index
      %26 = vector.load %arg7[%c0_21, %c0_22] : memref<1x64xf32, #tpu.memory_space<vmem>>, vector<1x64xf32>
      %27 = arith.addf %25, %26 : vector<1x64xf32>
      %cst_23 = arith.constant 5.000000e-01 : f32
      %28 = vector.broadcast %cst_23 : f32 to vector<1x64xf32>
      %29 = arith.mulf %28, %27 : vector<1x64xf32>
      %cst_24 = arith.constant 0.707106769 : f32
      %30 = vector.broadcast %cst_24 : f32 to vector<1x64xf32>
      %31 = arith.mulf %27, %30 : vector<1x64xf32>
      %32 = math.erf %31 : vector<1x64xf32>
      %cst_25 = arith.constant 1.000000e+00 : f32
      %33 = vector.broadcast %cst_25 : f32 to vector<1x64xf32>
      %34 = arith.addf %33, %32 : vector<1x64xf32>
      %35 = arith.mulf %29, %34 : vector<1x64xf32>
      %36 = tpu.concatenate %35, %35 in 1 : vector<1x64xf32>, vector<1x64xf32> -> vector<1x128xf32>
      %c0_26 = arith.constant 0 : index
      %c0_27 = arith.constant 0 : index
      %37 = vector.load %arg9[%c0_26, %c0_27] : memref<1x128xf32, #tpu.memory_space<vmem>>, vector<1x128xf32>
      tpu.vector_store %arg9[%c0_26, %c0_27], %36 {strides = array<i32>} : memref<1x128xf32, #tpu.memory_space<vmem>>, vector<1x128xf32>,
    } else {
    }
    %c0 = arith.constant 0 : index
    %c0_1 = arith.constant 0 : index
    %3 = vector.load %arg9[%c0, %c0_1] : memref<1x128xf32, #tpu.memory_space<vmem>>, vector<1x128xf32>
    %c0_2 = arith.constant 0 : index
    %c0_3 = arith.constant 0 : index
    %c0_4 = arith.constant 0 : index
    %4 = vector.load %arg2[%c0_2, %c0_3, %c0_4] : memref<1x8x128xf32, #tpu.memory_space<vmem>>, vector<1x8x128xf32>
    %5 = vector.shape_cast %4 : vector<1x8x128xf32> to vector<8x128xf32>
    %6 = vector.broadcast %3 : vector<1x128xf32> to vector<8x128xf32>
    %7 = arith.mulf %5, %6 : vector<8x128xf32>
    %c0_5 = arith.constant 0 : index
    %c0_6 = arith.constant 0 : index
    %c0_7 = arith.constant 0 : index
    %8 = vector.load %arg8[%c0_5, %c0_6, %c0_7] : memref<1x8x128xf32, #tpu.memory_space<vmem>>, vector<1x8x128xf32>
    %9 = vector.shape_cast %8 : vector<1x8x128xf32> to vector<8x128xf32>
    %10 = vector.shape_cast %7 : vector<8x128xf32> to vector<1x8x128xf32>
    tpu.vector_store %arg8[%c0_5, %c0_6, %c0_7], %10 {strides = array<i32>} : memref<1x8x128xf32, #tpu.memory_space<vmem>>, vector<1x8x128xf32>,
    return
  }
  func.func @transform_0(%arg0: i32, %arg1: i32) -> (i32, i32, i32) {
    %c0_i32 = arith.constant 0 : i32
    %c0_i32_0 = arith.constant 0 : i32
    return %arg0, %arg1, %c0_i32 : i32, i32, i32
  }
  func.func @transform_1(%arg0: i32, %arg1: i32) -> (i32, i32, i32) {
    %c0_i32 = arith.constant 0 : i32
    %c0_i32_0 = arith.constant 0 : i32
    %c0_i32_1 = arith.constant 0 : i32
    return %arg0, %c0_i32, %c0_i32_0 : i32, i32, i32
  }
  func.func @transform_2(%arg0: i32, %arg1: i32) -> (i32, i32) {
    %c0_i32 = arith.constant 0 : i32
    %c0_i32_0 = arith.constant 0 : i32
    %c0_i32_1 = arith.constant 0 : i32
    return %c0_i32, %c0_i32_0 : i32, i32
  }
  func.func @transform_3(%arg0: i32, %arg1: i32) -> (i32, i32) {
    %c0_i32 = arith.constant 0 : i32
    %c0_i32_0 = arith.constant 0 : i32
    %c0_i32_1 = arith.constant 0 : i32
    return %c0_i32, %c0_i32_0 : i32, i32
  }
  func.func @transform_4(%arg0: i32, %arg1: i32) -> (i32, i32) {
    %c0_i32 = arith.constant 0 : i32
    %c0_i32_0 = arith.constant 0 : i32
    %c0_i32_1 = arith.constant 0 : i32
    return %c0_i32, %c0_i32_0 : i32, i32
  }
  func.func @transform_5(%arg0: i32, %arg1: i32) -> (i32, i32) {
    %c0_i32 = arith.constant 0 : i32
    %c0_i32_0 = arith.constant 0 : i32
    %c0_i32_1 = arith.constant 0 : i32
    return %c0_i32, %c0_i32_0 : i32, i32
  }
  func.func @transform_6(%arg0: i32, %arg1: i32) -> (i32, i32, i32) {
    %c0_i32 = arith.constant 0 : i32
    %c0_i32_0 = arith.constant 0 : i32
    return %arg0, %arg1, %c0_i32 : i32, i32, i32
  }
}

</mosaic_0001>

<bundles_post_ra>
// kernel: tpu_custom_call.1
= control target key start
LH: loop header
LB: loop body
LE: loop exit
PB: predicated region body
PF: predicated region fallthrough
CT: control target
= control target key end

     0   :  { %s889_s0 = inlined_call_operand.vmem [shape: f32[2,8,128], index: 0, kind: input, shape index: {}]   ;;  %s890_s1 = inlined_call_operand.vmem [shape: f32[2,16,32], index: 1, kind: input, shape index: {}]   ;;  %s891_s2 = inlined_call_operand.vmem [shape: f32[64,32], index: 2, kind: input, shape index: {}]   ;;  %s892_s3 = inlined_call_operand.vmem [shape: f32[1,32], index: 3, kind: input, shape index: {}]   ;;  %s893_s4 = inlined_call_operand.vmem [shape: f32[32,64], index: 4, kind: input, shape index: {}]   ;;  %s894_s5 = inlined_call_operand.vmem [shape: f32[1,64], index: 5, kind: input, shape index: {}]   ;;  %s895_s6 = inlined_call_operand.hbm [shape: f32[2,8,128], index: 6, kind: output, shape index: {}]  }
   0x1   :  { %896 = sst [smem:[#allocation6_spill]] %s890_s1 }
   0x2   :  { %11 = vsyncpa [#allocation4], 0 }
   0x3   :  { %13 = vsyncpa [#allocation4 + $0x1], 0  ;;  %s735_s21 = smov 0   ;;  %s737_s22 = smov 0  }
   0x4   :  { %s739_s23 = smov 0   ;;  %s741_s24 = smov 0  }
   0x5   :  { %s743_s25 = smov 0   ;;  %s745_s26 = smov 0  }
   0x6 LB: > { %s541_s27 = sadd.s32 4294967295, %s696_s26   ;;  %s542_s28 = sadd.s32 4294967294, %s696_s26   ;;  %s696_s26 = sphi %s745_s26, %s19_s26   ;;  %s692_s25 = sphi %s743_s25, %s904_s25   ;;  %s688_s24 = sphi %s741_s24, %s903_s24   ;;  %s684_s23 = sphi %s739_s23, %s902_s23   ;;  %s680_s22 = sphi %s737_s22, %s901_s22   ;;  %s676_s21 = sphi %s735_s21, %s900_s21  }
   0x7   : > { %s31_s29 = sadd.s32 1, %s692_s25  ;;  %s178_s30 = sadd.s32 1, %s684_s23 }
   0x8   : > { %p33_p0 = scmp.ge.s32.totalorder %s31_s29, 2  ;;  %p188_p1 = scmp.ne.s32.totalorder %s684_s23, %s680_s22 }
   0x9   : > { %p189_p2 = scmp.eq.s32.totalorder %s541_s27, 1  ;;  %p194_p3 = scmp.ne.s32.totalorder %s680_s22, %s676_s21 }
   0xa   : > { %s906_s29 = smov (%p33_p0, %s31_s29), 0  ;;  %p195_p5 = scmp.eq.s32.totalorder %s542_s28, 1 }
   0xb   : > { %p775_p4 = por %p189_p2, %p188_p1  ;;  %s173_s8 = ssub.s32 %s692_s25, %s906_s29 }
   0xc   : > { %p545_p6 = scmp.ge.s32.totalorder %s696_s26, 1  ;;  %p176_p7 = scmp.eq.s32.totalorder %s173_s8, 0 }
   0xd   : > { %p782_p8 = por %p195_p5, %p194_p3  ;;  %p243_p9 = scmp.lt.s32.totalorder %s696_s26, 3 }
   0xe   : > { %s788_s10 = scalar_select %p176_p7, %s684_s23, %s178_s30  }
   0xf   : > { %p244_p10 = pnand %p545_p6, %p243_p9 }
  0x10   : > { %p280_p11 = scmp.lt.s32.totalorder (!%p244_p10), %s688_s24, 1  ;;  %s899_s1 = sld [smem:[#allocation6_spill]] (!%p244_p10) }
  0x11   : > { %247 = sbr.rel (%p244_p10) target bundleno = 596 (0x254), region = 44  ;;  %s698_s17 = smov (!%p244_p10), 32  }
  0x12   : > { %s699_s19 = smov (!%p244_p10), 64   ;;  %s277_s20 = sand.u32 (!%p244_p10), 1, %s680_s22  }
  0x13   : > { %s546_s28 = sshll.u32 (!%p244_p10), %s277_s20, 3 }
  0x16   : > { %v330_v0 = vld [vmem:[%s891_s2 + $0x38] sm:$0xff]  ;;  %v329_v1 = vld [vmem:[%s891_s2 + $0x30] sm:$0xff]  ;;  %s798_s15 = scalar_select %p280_p11, %s688_s24, 1  ;;  %v328_v2 = vld [vmem:[%s891_s2 + $0x28] sm:$0xff]  ;;  %vm298_vm0 = vcmask 261120   ;;  %vm332_vm1 = vcmask 523264  }
  0x17   : > { %344 = vmatpush.msra.mxu0 %v330_v0  ;;  %v327_v3 = vld [vmem:[%s891_s2 + $0x20] sm:$0xff]  ;;  %v326_v6 = vld [vmem:[%s891_s2 + $0x18] sm:$0xff]  ;;  %v325_v13 = vld [vmem:[%s891_s2 + $0x10] sm:$0xff] }
  0x18   : > { %s557_s18 = sshll.u32 %s798_s15, 4  ;;  %v324_v15 = vld [vmem:[%s891_s2 + $0x8] sm:$0xff]  ;;  %v323_v22 = vld [vmem:[%s891_s2] sm:$0xff]  ;;  %v359_v23 = vld [vmem:[%s893_s4 + $0x18] sm:$0xff]  ;;  %s547_s27 = sshll.u32 %s798_s15, 3 }
  0x19   : > { %345 = vmatpush.msra.mxu0 %v329_v1  ;;  %s291_s30 = scalar_lea.vmem %s899_s1, %s557_s18  ;;  %v358_v24 = vld [vmem:[%s893_s4 + $0x10] sm:$0xff]  ;;  %376 = vmatpush.msra.mxu1 %v359_v23  ;;  %v357_v33 = vld [vmem:[%s893_s4 + $0x8] sm:$0xff]  ;;  %v356_v34 = vld [vmem:[%s893_s4] sm:$0xff]  ;;  %s286_s12 = scalar_lea.vmem %s889_s0, %s547_s27 }
  0x1a   : > { %v296_v4 = vld [vmem:[%s291_s30] sm:$0xff]  ;;  %v297_v5 = vld [vmem:[%s291_s30 + $0x8] sm:$0xff]  ;;  %s554_s30 = sshll.u32 %s688_s24, 3  ;;  %s442_s15 = scalar_lea.sflag [#allocation4], %s277_s20 }
  0x1b   : > { %346 = vmatpush.msra.mxu0 %v328_v2  ;;  %v300_v7 = vsel %vm298_vm0, %v297_v5, -inf  ;;  %v308_v8 = vsel %vm298_vm0, %v296_v4, 0.0  ;;  %v309_v9 = vsel %vm298_vm0, %v297_v5, 0.0  ;;  %v299_v10 = vsel %vm298_vm0, %v296_v4, -inf  ;;  %377 = vmatpush.msra.mxu1 %v358_v24  ;;  %v331_v35 = vld [vmem:[%s892_s3] sm:$0x1]  ;;  %s453_s16 = scalar_lea.hbm %s895_s6, %s554_s30 }
  0x1c   : > { %v310_v11 = vadd.f32 %v309_v9, %v308_v8  ;;  %v301_v12 = vmax.f32 %v299_v10, %v300_v7  ;;  %v360_v38 = vld [vmem:[%s894_s5] sm:$0x1]  ;;  %s638_s30 = scalar_lea.hbm %s895_s6, 16 }
  0x1d   : > { %347 = vmatpush.msra.mxu0 %v327_v3  ;;  %378 = vmatpush.msra.mxu1 %v357_v33 }
  0x1e   : > { %v311_v14 = vrot.slane %v310_v11, 4  ;;  %v302_v25 = vrot.slane %v301_v12, 4 }
  0x1f   : > { %348 = vmatpush.msra.mxu0 %v326_v6  ;;  %379 = vmatpush.msra.mxu1 %v356_v34 }
  0x20   : > { %v312_v16 = vadd.f32 %v311_v14, %v310_v11  ;;  %v303_v26 = vmax.f32 %v301_v12, %v302_v25 }
  0x21   : > { %349 = vmatpush.msra.mxu0 %v325_v13 }
  0x22   : > { %v313_v17 = vrot.slane %v312_v16, 2  ;;  %v304_v27 = vrot.slane %v303_v26, 2 }
  0x23   : > { %350 = vmatpush.msra.mxu0 %v324_v15 }
  0x24   : > { %v314_v18 = vadd.f32 %v313_v17, %v312_v16  ;;  %v305_v28 = vmax.f32 %v303_v26, %v304_v27 }
  0x25   : > { %351 = vmatpush.msra.mxu0 %v323_v22 }
  0x26   : > { %v315_v19 = vrot.slane %v314_v18, 1  ;;  %v306_v29 = vrot.slane %v305_v28, 1 }
  0x28   : > { %v316_v20 = vadd.f32 %v315_v19, %v314_v18  ;;  %v307_v30 = vmax.f32 %v305_v28, %v306_v29  ;;  %v435_v18 = vld [vmem:[%s286_s12] sm:$0xff] }
  0x2a   : > { %v317_v21 = vmul.f32 0.0625, %v316_v20 }
  0x2c   : > { %319 = vrot.lane.b32.xlu0 %v317_v21, %s698_s17  ;;  %s279_s17 = scalar_lea.vmem [#allocation3], %s546_s28 }
  0x2d   : > { %s455_s18 = sshll.u32 %s279_s17, 4  ;;  %s456_s18 = int_to_ptr.vmem [resolvable:$true] %s455_s18 }
  0x9e   : > { %v320_v31 = vpop.permute.xlu0 %319 }
  0x9f   : > { %v322_v32 = vsel %vm298_vm0, %v307_v30, %v320_v31 }
  0xa0   : > { %550 = vmatmul.msk.f32.vlgmr.msra.gmra.mxu0 %vm332_vm1, %v322_v32 }
 0x11d   : > { %v353_v36 = vpop.f32.mrf.mxu0 }
 0x11e   : > { %v354_v37 = vadd.f32 %v353_v36, %v331_v35 }
 0x120   : > { %551 = vmatmul.msk.f32.vlgmr.msra.gmra.mxu1 %vm298_vm0, %v354_v37 }
 0x19d   : > { %v381_v39 = vpop.f32.mrf.mxu1 }
 0x19e   : > { %v382_v40 = vadd.f32 %v381_v39, %v360_v38 }
 0x1a0   : > { %v385_v41 = vmul.f32 0.70710677, %v382_v40  ;;  %v384_v13 = vmul.f32 0.5, %v382_v40 }
 0x1a2   : > { %v386_v42 = vmul.f32 %v385_v41, %v385_v41 }
 0x1a4   : > { %v387_v43 = vmin.f32 %v386_v42, 16.0 }
 0x1a6   : > { %v388_v44 = vmul.f32 2.1237322e-06, %v387_v43  ;;  %v399_v45 = vmul.f32 3.8918573e-05, %v387_v43 }
 0x1a8   : > { %v389_v46 = vadd.f32 0.00028619796, %v388_v44  ;;  %v400_v47 = vadd.f32 0.001143296, %v399_v45 }
 0x1aa   : > { %v390_v48 = vmul.f32 %v389_v46, %v387_v43  ;;  %v401_v49 = vmul.f32 %v400_v47, %v387_v43 }
 0x1ac   : > { %v402_v50 = vadd.f32 0.014752088, %v401_v49  ;;  %v391_v51 = vadd.f32 0.0036580483, %v390_v48 }
 0x1ae   : > { %v403_v52 = vmul.f32 %v402_v50, %v387_v43  ;;  %v392_v54 = vmul.f32 %v391_v51, %v387_v43 }
 0x1b0   : > { %v404_v53 = vadd.f32 0.112945676, %v403_v52  ;;  %v393_v57 = vadd.f32 0.05243302, %v392_v54 }
 0x1b2   : > { %v405_v55 = vmul.f32 %v404_v53, %v387_v43  ;;  %v394_v60 = vmul.f32 %v393_v57, %v387_v43 }
 0x1b4   : > { %v406_v56 = vadd.f32 0.4994258, %v405_v55  ;;  %v395_v61 = vadd.f32 0.18741608, %v394_v60 }
 0x1b6   : > { %v407_v58 = vmul.f32 %v406_v56, %v387_v43  ;;  %v396_v63 = vmul.f32 %v395_v61, %v387_v43 }
 0x1b8   : > { %v408_v59 = vadd.f32 1.0, %v407_v58  ;;  %v397_v3 = vadd.f32 1.1283791, %v396_v63 }
 0x1ba   : > { %616 = vrcp.f32 %v408_v59  ;;  %v420_v2 = vand.u32 2147483648, %v408_v59  ;;  %v418_v5 = vand.u32 2147483647, %v408_v59  ;;  %vm414_vm3 = vweird.f32 %v408_v59 }
 0x1bb   : > { %v398_v8 = vmul.f32 %v397_v3, %v385_v41 }
 0x1bc   : > { %v421_v7 = vor.u32 1.1754944e-38, %v420_v2  ;;  %vm419_vm5 = vcmp.eq.f32.partialorder %v418_v5, 8.507059e+37 }
 0x1c0   : > { %v617_v62 = vpop.eup %616 }
 0x1c1   : > { %v410_v0 = vmul.f32 %v617_v62, %v408_v59  ;;  %vm415_vm2 = vweird.f32 %v617_v62 }
 0x1c2   : > { %vm416_vm4 = vmor %vm414_vm3, %vm415_vm2 }
 0x1c3   : > { %v411_v1 = vsub.f32 1.0, %v410_v0 }
 0x1c5   : > { %v412_v4 = vmul.f32 %v617_v62, %v411_v1 }
 0x1c7   : > { %v413_v6 = vadd.f32 %v617_v62, %v412_v4 }
 0x1c9   : > { %v417_v9 = vsel %vm416_vm4, %v617_v62, %v413_v6 }
 0x1ca   : > { %v422_v10 = vsel %vm419_vm5, %v421_v7, %v417_v9 }
 0x1cb   : > { %v423_v11 = vmul.f32 %v422_v10, %v398_v8 }
 0x1cd   : > { %v552_v12 = vclamps-f32 %v423_v11, 1.0 }
 0x1cf   : > { %v426_v14 = vadd.f32 1.0, %v552_v12 }
 0x1d1   : > { %v427_v15 = vmul.f32 %v426_v14, %v384_v13 }
 0x1d3   : > { %429 = vrot.lane.b32.xlu0 %v427_v15, %s699_s19  ;;  %s457_s19 = sshll.u32 %s453_s16, 4  ;;  %s458_s19 = int_to_ptr.hbm [resolvable:$true] %s457_s19 }
 0x1d4   : > { %s632_s24 = sshra.s32 %s458_s19, 4  ;;  %s633_s24 = int_to_ptr.hbm [resolvable:$true] %s632_s24 }
 0x1d5   : > { %s634_s1 = scalar_lea.hbm %s633_s24, 8  ;;  %p639_p1 = scmp.lt.s32.totalorder %s633_s24, %s895_s6 }
 0x1d6   : > { %p635_p12 = scmp.ne.s32.totalorder %s633_s24, %s634_s1  ;;  %p640_p2 = scmp.lt.s32.totalorder %s638_s30, %s634_s1 }
 0x1d8   : > { %p636_p13 = pnand %p635_p12, %p775_p4  ;;  %p641_p3 = por %p640_p2, %p639_p1 }
 0x1da   : > { %p637_p0 = pneg %p636_p13 }
 0x1dc   : > { %p642_p5 = pnand %p641_p3, %p637_p0 }
 0x245   : > { %v430_v16 = vpop.permute.xlu0 %429 }
 0x246   : > { %v432_v17 = vsel %vm332_vm1, %v427_v15, %v430_v16 }
 0x247   : > { %433 = vst [vmem:[#allocation2] sm:$0x1] %v432_v17 }
 0x24e   : > { %v615_v19 = vld [vmem:[#allocation2] ss:$0 sm:$0xff] }
 0x24f   : > { %v439_v20 = vmul.f32 %v615_v19, %v435_v18 }
 0x251   : > { %440 = vst [vmem:[%s279_s17] sm:$0xff] %v439_v20 }
 0x252   : > { %645 = shalt.err (!%p642_p5)
}
 0x253   : > { %558 = dma.vmem_to_hbm [thread:$0]  (%p775_p4), %s456_s18, 128, %s458_s19, %s442_s15  }
 0x254 PF: > { %p564_p6 = scmp.ge.s32.totalorder %s696_s26, 2  ;;  %s469_s20 = sand.u32 1, %s676_s21  }
 0x255   : > { %s470_s12 = scalar_lea.sflag [#allocation4], %s469_s20 }
 0x256   : > { %p561_p7 = pnand %p564_p6, %p782_p8 }
 0x258   : > { %p562_p9 = pneg %p561_p7 }
 0x25a   : > { %671 = dma.done.wait (%p562_p9), %s470_s12, 128  }
 0x25b   : > { %673 = vsyncadd (%p562_p9), %s470_s12, 4294967168  ;;  %s19_s26 = sadd.s32 1, %s696_s26   ;;  %s900_s21 = smov %s680_s22 }
 0x25c   : > { %p16_p10 = scmp.ge.s32.totalorder %s19_s26, 4   ;;  %s901_s22 = smov %s684_s23 }
 0x25d   : > { %s902_s23 = smov %s788_s10  ;;  %s903_s24 = smov %s692_s25 }
 0x25e   : > { %s904_s25 = smov %s906_s29  ;;  %18 = sbr.rel (!%p16_p10) target bundleno = 6 (0x6), region = 86 }
 0x263   :  { %476 = vsyncpa [#allocation4], 1 }
 0x264   :  { %478 = vsyncpa [#allocation4 + $0x1], 1 }

</bundles_post_ra>
